<compile_context>
chip_gen: v6e
topology: v6e:2x2x1
jax: 0.10.0
libtpu: 0.0.40
codegen_flags: <defaults>
</compile_context>

<pallas_src>
import functools

import jax
import jax.numpy as jnp
from jax.experimental import pallas as pl
from jax.experimental.pallas import tpu as pltpu


def _round_up(x, m):
    return ((x + m - 1) // m) * m


# ----------------------------------------------------------------------------
# Fused Pallas kernel: y = act_n(... act_1(x @ W1 + b1) ... @ Wn + bn)
# ----------------------------------------------------------------------------
def _decoder_fused_kernel(x_ref, *refs, activations):
    # refs = (w1, b1, w2, b2, ..., wn, bn, o_ref)
    o_ref = refs[-1]
    wb_refs = refs[:-1]

    h = x_ref[...]                                     # (TB, Din) f32
    for li, act in enumerate(activations):
        w = wb_refs[2 * li][...]                       # (Din_l, Dout_l), maybe bf16
        b = wb_refs[2 * li + 1][...]                   # (1, Dout_l) f32
        y = jnp.dot(h.astype(w.dtype), w,
                    preferred_element_type=jnp.float32)
        y = y + b.astype(jnp.float32)                  # bias/activation in f32 (VPU/EUP)
        if act == "relu":
            y = jnp.maximum(y, 0.0)
        elif act == "sigmoid":
            y = jax.nn.sigmoid(y)
        elif act == "none":
            pass
        else:
            raise ValueError(f"unknown activation {act}")
        h = y
    o_ref[...] = h.astype(o_ref.dtype)


# ----------------------------------------------------------------------------
# Parameter prep (done ONCE, outside the forward path)
# ----------------------------------------------------------------------------
def init_decoder_params(key, dims):
    """Deterministic PyTorch-style init: Linear dims[i] -> dims[i+1]."""
    params = []
    for i in range(len(dims) - 1):
        key, kw, kb = jax.random.split(key, 3)
        fan_in = dims[i]
        bound = 1.0 / (fan_in ** 0.5)
        w = jax.random.uniform(kw, (dims[i + 1], dims[i]), jnp.float32, -bound, bound)
        b = jax.random.uniform(kb, (dims[i + 1],), jnp.float32, -bound, bound)
        params.append((w, b))
    return params


def prep_decoder_params(params):
    """Hoisted layout prep: W [Dout,Din] -> W_t [Din,Dout]; b -> [1,Dout]."""
    return [(jnp.transpose(w), b.reshape(1, b.shape[0])) for (w, b) in params]


# ----------------------------------------------------------------------------
# Decoder forward: ONE fused pallas_call, batch-tiled grid
# ----------------------------------------------------------------------------
def decoder_forward(params_t, activations, x, *, batch_tile=512,
                    use_bf16_matmul=False):
    """params_t: list of (w_t [Din,Dout], b [1,Dout]) from prep_decoder_params."""
    assert len(params_t) == len(activations)
    B, Din = x.shape
    Dout = params_t[-1][0].shape[1]

    # Batch tile: multiple of 8 sublanes, capped (mem/overhead-bound regime;
    # >=512 amortizes the ~600-cycle per-step overhead, small batches fit in one tile).
    tb = min(_round_up(batch_tile, 8), _round_up(B, 8))
    Bp = _round_up(B, tb)
    if Bp != B:
        x = jnp.pad(x, ((0, Bp - B), (0, 0)))
    grid = (Bp // tb,)

    in_specs = [pl.BlockSpec((tb, Din), lambda i: (i, 0))]
    args = [x]
    for (w_t, b2) in params_t:
        din_l, dout_l = w_t.shape
        if use_bf16_matmul:
            w_t = w_t.astype(jnp.bfloat16)
        # Weights/biases: full-array blocks, constant index_map -> VMEM-resident
        # across all grid steps (total params ~164 KB, trivially fits).
        in_specs.append(pl.BlockSpec((din_l, dout_l), lambda i: (0, 0)))
        in_specs.append(pl.BlockSpec((1, dout_l), lambda i: (0, 0)))
        args += [w_t, b2]

    kernel = functools.partial(_decoder_fused_kernel,
                               activations=tuple(activations))
    out = pl.pallas_call(
        kernel,
        out_shape=jax.ShapeDtypeStruct((Bp, Dout), x.dtype),
        grid=grid,
        in_specs=in_specs,
        out_specs=pl.BlockSpec((tb, Dout), lambda i: (i, 0)),
        compiler_params=pltpu.CompilerParams(
            dimension_semantics=("parallel",),        # shard batch across TCs (v7x)
            vmem_limit_bytes=32 * 1024 * 1024,        # explicit, safe on v7x 64 MiB
        ),
    )(*args)
    return out[:B]


if __name__ == "__main__":
    # Small shapes consistent with an AE decoder: latent=16 -> 64 -> 128 -> 256
    batch = 8
    dims = (16, 64, 128, 256)
    activations = ("relu", "relu", "sigmoid")

    key = jax.random.PRNGKey(0)
    key, kx = jax.random.split(key)
    x = jax.random.normal(kx, (batch, dims[0]), jnp.float32)

    params = init_decoder_params(key, dims)
    params_t = prep_decoder_params(params)            # hoisted transpose/reshape

    out = decoder_forward(params_t, activations, x)
    out = jax.block_until_ready(out)

    # Plain-JAX reference of the same Sequential.
    ref = x
    for (w, b), act in zip(params, activations):
        ref = ref @ w.T + b
        if act == "relu":
            ref = jnp.maximum(ref, 0.0)
        elif act == "sigmoid":
            ref = jax.nn.sigmoid(ref)

    assert out.shape == (batch, dims[-1])
    assert jnp.allclose(out, ref, atol=1e-5, rtol=1e-5)

    print("KERNEL_OK")
</pallas_src>

<mosaic_0001>
module attributes {stable_mosaic.version = 11 : i64} {
  func.func @_decoder_fused_kernel(%arg0: i32, %arg1: memref<8x16xf32, #tpu.memory_space<vmem>>, %arg2: memref<16x64xf32, #tpu.memory_space<vmem>>, %arg3: memref<1x64xf32, #tpu.memory_space<vmem>>, %arg4: memref<64x128xf32, #tpu.memory_space<vmem>>, %arg5: memref<1x128xf32, #tpu.memory_space<vmem>>, %arg6: memref<128x256xf32, #tpu.memory_space<vmem>>, %arg7: memref<1x256xf32, #tpu.memory_space<vmem>>, %arg8: memref<8x256xf32, #tpu.memory_space<vmem>>) attributes {dimension_semantics = [#tpu.dimension_semantics<parallel>], iteration_bounds = array<i64: 1>, scalar_prefetch = 0 : i64, scratch_operands = 0 : i64, tpu.core_type = #tpu.core_type<tc>, window_params = [{transform_indices = @transform_0, window_bounds = array<i64: 8, 16>}, {pipeline_mode = #tpu.pipeline_mode<synchronous>, transform_indices = @transform_1, window_bounds = array<i64: 16, 64>}, {pipeline_mode = #tpu.pipeline_mode<synchronous>, transform_indices = @transform_2, window_bounds = array<i64: 1, 64>}, {pipeline_mode = #tpu.pipeline_mode<synchronous>, transform_indices = @transform_3, window_bounds = array<i64: 64, 128>}, {pipeline_mode = #tpu.pipeline_mode<synchronous>, transform_indices = @transform_4, window_bounds = array<i64: 1, 128>}, {pipeline_mode = #tpu.pipeline_mode<synchronous>, transform_indices = @transform_5, window_bounds = array<i64: 128, 256>}, {pipeline_mode = #tpu.pipeline_mode<synchronous>, transform_indices = @transform_6, window_bounds = array<i64: 1, 256>}, {transform_indices = @transform_7, window_bounds = array<i64: 8, 256>}]} {
    %c0 = arith.constant 0 : index
    %c0_0 = arith.constant 0 : index
    %0 = vector.load %arg1[%c0, %c0_0] : memref<8x16xf32, #tpu.memory_space<vmem>>, vector<8x16xf32>
    %c0_1 = arith.constant 0 : index
    %c0_2 = arith.constant 0 : index
    %1 = vector.load %arg2[%c0_1, %c0_2] : memref<16x64xf32, #tpu.memory_space<vmem>>, vector<16x64xf32>
    %c0_3 = arith.constant 0 : index
    %c0_4 = arith.constant 0 : index
    %2 = vector.load %arg3[%c0_3, %c0_4] : memref<1x64xf32, #tpu.memory_space<vmem>>, vector<1x64xf32>
    %cst = arith.constant dense<0.000000e+00> : vector<8x64xf32>
    %3 = tpu.matmul %0, %1, %cst {dimension_numbers = #tpu.dot_dimension_numbers<[1], [0], [0], [1], [0, 0, 1, 1], [], []>} : vector<8x16xf32>, vector<16x64xf32>, vector<8x64xf32> -> vector<8x64xf32>
    %4 = vector.broadcast %2 : vector<1x64xf32> to vector<8x64xf32>
    %5 = arith.addf %3, %4 : vector<8x64xf32>
    %cst_5 = arith.constant 0.000000e+00 : f32
    %6 = vector.broadcast %cst_5 : f32 to vector<8x64xf32>
    %7 = arith.maximumf %5, %6 : vector<8x64xf32>
    %c0_6 = arith.constant 0 : index
    %c0_7 = arith.constant 0 : index
    %8 = vector.load %arg4[%c0_6, %c0_7] : memref<64x128xf32, #tpu.memory_space<vmem>>, vector<64x128xf32>
    %c0_8 = arith.constant 0 : index
    %c0_9 = arith.constant 0 : index
    %9 = vector.load %arg5[%c0_8, %c0_9] : memref<1x128xf32, #tpu.memory_space<vmem>>, vector<1x128xf32>
    %cst_10 = arith.constant dense<0.000000e+00> : vector<8x128xf32>
    %10 = tpu.matmul %7, %8, %cst_10 {dimension_numbers = #tpu.dot_dimension_numbers<[1], [0], [0], [1], [0, 0, 1, 1], [], []>} : vector<8x64xf32>, vector<64x128xf32>, vector<8x128xf32> -> vector<8x128xf32>
    %11 = vector.broadcast %9 : vector<1x128xf32> to vector<8x128xf32>
    %12 = arith.addf %10, %11 : vector<8x128xf32>
    %cst_11 = arith.constant 0.000000e+00 : f32
    %13 = vector.broadcast %cst_11 : f32 to vector<8x128xf32>
    %14 = arith.maximumf %12, %13 : vector<8x128xf32>
    %c0_12 = arith.constant 0 : index
    %c0_13 = arith.constant 0 : index
    %15 = vector.load %arg6[%c0_12, %c0_13] : memref<128x256xf32, #tpu.memory_space<vmem>>, vector<128x256xf32>
    %c0_14 = arith.constant 0 : index
    %c0_15 = arith.constant 0 : index
    %16 = vector.load %arg7[%c0_14, %c0_15] : memref<1x256xf32, #tpu.memory_space<vmem>>, vector<1x256xf32>
    %cst_16 = arith.constant dense<0.000000e+00> : vector<8x256xf32>
    %17 = tpu.matmul %14, %15, %cst_16 {dimension_numbers = #tpu.dot_dimension_numbers<[1], [0], [0], [1], [0, 0, 1, 1], [], []>} : vector<8x128xf32>, vector<128x256xf32>, vector<8x256xf32> -> vector<8x256xf32>
    %18 = vector.broadcast %16 : vector<1x256xf32> to vector<8x256xf32>
    %19 = arith.addf %17, %18 : vector<8x256xf32>
    %20 = arith.negf %19 : vector<8x256xf32>
    %21 = math.exp %20 : vector<8x256xf32>
    %cst_17 = arith.constant 1.000000e+00 : f32
    %22 = vector.broadcast %cst_17 : f32 to vector<8x256xf32>
    %23 = arith.addf %22, %21 : vector<8x256xf32>
    %24 = arith.divf %22, %23 : vector<8x256xf32>
    %c0_18 = arith.constant 0 : index
    %c0_19 = arith.constant 0 : index
    %25 = vector.load %arg8[%c0_18, %c0_19] : memref<8x256xf32, #tpu.memory_space<vmem>>, vector<8x256xf32>
    tpu.vector_store %arg8[%c0_18, %c0_19], %24 {strides = array<i32>} : memref<8x256xf32, #tpu.memory_space<vmem>>, vector<8x256xf32>,
    return
  }
  func.func @transform_0(%arg0: i32) -> (i32, i32) {
    %c0_i32 = arith.constant 0 : i32
    %c0_i32_0 = arith.constant 0 : i32
    return %arg0, %c0_i32 : i32, i32
  }
  func.func @transform_1(%arg0: i32) -> (i32, i32) {
    %c0_i32 = arith.constant 0 : i32
    %c0_i32_0 = arith.constant 0 : i32
    %c0_i32_1 = arith.constant 0 : i32
    return %c0_i32, %c0_i32_0 : i32, i32
  }
  func.func @transform_2(%arg0: i32) -> (i32, i32) {
    %c0_i32 = arith.constant 0 : i32
    %c0_i32_0 = arith.constant 0 : i32
    %c0_i32_1 = arith.constant 0 : i32
    return %c0_i32, %c0_i32_0 : i32, i32
  }
  func.func @transform_3(%arg0: i32) -> (i32, i32) {
    %c0_i32 = arith.constant 0 : i32
    %c0_i32_0 = arith.constant 0 : i32
    %c0_i32_1 = arith.constant 0 : i32
    return %c0_i32, %c0_i32_0 : i32, i32
  }
  func.func @transform_4(%arg0: i32) -> (i32, i32) {
    %c0_i32 = arith.constant 0 : i32
    %c0_i32_0 = arith.constant 0 : i32
    %c0_i32_1 = arith.constant 0 : i32
    return %c0_i32, %c0_i32_0 : i32, i32
  }
  func.func @transform_5(%arg0: i32) -> (i32, i32) {
    %c0_i32 = arith.constant 0 : i32
    %c0_i32_0 = arith.constant 0 : i32
    %c0_i32_1 = arith.constant 0 : i32
    return %c0_i32, %c0_i32_0 : i32, i32
  }
  func.func @transform_6(%arg0: i32) -> (i32, i32) {
    %c0_i32 = arith.constant 0 : i32
    %c0_i32_0 = arith.constant 0 : i32
    %c0_i32_1 = arith.constant 0 : i32
    return %c0_i32, %c0_i32_0 : i32, i32
  }
  func.func @transform_7(%arg0: i32) -> (i32, i32) {
    %c0_i32 = arith.constant 0 : i32
    %c0_i32_0 = arith.constant 0 : i32
    return %arg0, %c0_i32 : i32, i32
  }
}

</mosaic_0001>

<bundles_post_ra>
// kernel: tpu_custom_call.1
= control target key start
LH: loop header
LB: loop body
LE: loop exit
PB: predicated region body
PF: predicated region fallthrough
CT: control target
= control target key end

     0   :  { %12 = vsyncpa [#allocation3], 0  ;;  %s647_s0 = inlined_call_operand.hbm [shape: f32[8,16], index: 0, kind: input, shape index: {}]   ;;  %s648_s1 = inlined_call_operand.hbm [shape: f32[16,64], index: 1, kind: input, shape index: {}]   ;;  %s649_s2 = inlined_call_operand.vmem [shape: f32[1,64], index: 2, kind: input, shape index: {}]   ;;  %s650_s3 = inlined_call_operand.hbm [shape: f32[64,128], index: 3, kind: input, shape index: {}]   ;;  %s651_s4 = inlined_call_operand.vmem [shape: f32[1,128], index: 4, kind: input, shape index: {}]   ;;  %s652_s5 = inlined_call_operand.hbm [shape: f32[128,256], index: 5, kind: input, shape index: {}]   ;;  %s653_s6 = inlined_call_operand.vmem [shape: f32[1,256], index: 6, kind: input, shape index: {}]   ;;  %s654_s7 = inlined_call_operand.hbm [shape: f32[8,256], index: 7, kind: output, shape index: {}]  }
   0x1   :  { %13 = vsyncpa [#allocation6], 0 }
   0x2   :  { %14 = vsyncpa [#allocation9], 0 }
   0x3   :  { %15 = vsyncpa [#allocation4], 0  ;;  %s572_s24 = smov [#allocation5]  }
   0x4   :  { %s31_s25 = sshll.u32 %s572_s24, 4  ;;  %s32_s25 = int_to_ptr.vmem [resolvable:$true] %s31_s25 }
   0x5   :  { %s472_s26 = scalar_lea.vmem %s32_s25, 256  ;;  %p477_p1 = scmp.lt.s32.totalorder %s32_s25, %s32_s25 }
   0x6   :  { %p473_p0 = scmp.ne.s32.totalorder %s32_s25, %s472_s26  ;;  %p478_p2 = scmp.lt.s32.totalorder %s472_s26, %s472_s26 }
   0x8   :  { %p479_p3 = por %p478_p2, %p477_p1 }
   0xa   :  { %p480_p4 = pnand %p479_p3, %p473_p0 }
   0xc   :  { %483 = shalt.err (!%p480_p4)
}
   0xd   :  { %s573_s27 = smov 128   ;;  %s574_s28 = smov 8  }
   0xe   :  { %37 = dma.hbm_to_vmem [thread:$0]  %s648_s1, 256, %s32_s25, [#allocation6], %s573_s27, %s573_s27, %s574_s28  }
   0xf   :  { %s575_s8 = smov [#allocation2]   ;;  %s576_s10 = smov [#allocation7]  }
  0x10   :  { %s22_s9 = sshll.u32 %s575_s8, 4  ;;  %s45_s11 = sshll.u32 %s576_s10, 4  ;;  %s23_s9 = int_to_ptr.vmem [resolvable:$true] %s22_s9  ;;  %s46_s11 = int_to_ptr.vmem [resolvable:$true] %s45_s11 }
  0x11   :  { %s492_s12 = scalar_lea.vmem %s23_s9, 128  ;;  %p497_p6 = scmp.lt.s32.totalorder %s23_s9, %s23_s9 }
  0x12   :  { %p493_p5 = scmp.ne.s32.totalorder %s23_s9, %s492_s12  ;;  %p498_p7 = scmp.lt.s32.totalorder %s492_s12, %s492_s12 }
  0x14   :  { %p499_p8 = por %p498_p7, %p497_p6 }
  0x16   :  { %p500_p9 = pnand %p499_p8, %p493_p5 }
  0x18   :  { %503 = shalt.err (!%p500_p9)
}
  0x19   :  { %25 = dma.hbm_to_vmem [thread:$0]  %s647_s0, 128, %s23_s9, [#allocation3]  }
  0x1a   :  { %s512_s15 = scalar_lea.vmem %s46_s11, 1024  ;;  %p517_p11 = scmp.lt.s32.totalorder %s46_s11, %s46_s11 }
  0x1b   :  { %p513_p10 = scmp.ne.s32.totalorder %s46_s11, %s512_s15  ;;  %p518_p12 = scmp.lt.s32.totalorder %s512_s15, %s512_s15 }
  0x1d   :  { %p519_p13 = por %p518_p12, %p517_p11 }
  0x1f   :  { %p520_p0 = pnand %p519_p13, %p513_p10 }
  0x21   :  { %523 = shalt.err (!%p520_p0)
}
  0x22   :  { %51 = dma.hbm_to_vmem [thread:$0]  %s650_s3, 1024, %s46_s11, [#allocation6], %s573_s27, %s573_s27, %s574_s28  }
  0x23   :  { %s577_s17 = smov [#allocation8]  }
  0x24   :  { %s59_s18 = sshll.u32 %s577_s17, 4  ;;  %s60_s18 = int_to_ptr.vmem [resolvable:$true] %s59_s18 }
  0x25   :  { %s532_s19 = scalar_lea.vmem %s60_s18, 4096  ;;  %p537_p2 = scmp.lt.s32.totalorder %s60_s18, %s60_s18 }
  0x26   :  { %p533_p1 = scmp.ne.s32.totalorder %s60_s18, %s532_s19  ;;  %p538_p3 = scmp.lt.s32.totalorder %s532_s19, %s532_s19 }
  0x28   :  { %p539_p4 = por %p538_p3, %p537_p2 }
  0x2a   :  { %p540_p5 = pnand %p539_p4, %p533_p1 }
  0x2c   :  { %543 = shalt.err (!%p540_p5)
}
  0x2d   :  { %s578_s0 = smov 256   ;;  %s579_s20 = smov 16  }
  0x2e   :  { %65 = dma.hbm_to_vmem [thread:$0]  %s652_s5, 4096, %s60_s18, [#allocation9], %s578_s0, %s578_s0, %s579_s20  }
  0x2f   :  { %564 = dma.done.wait [#allocation3], 128  }
  0x30   :  { %565 = vsyncadd [#allocation3], 4294967168 }
  0x31   :  { %566 = dma.done.wait [#allocation6], 1280  }
  0x32   :  { %567 = vsyncadd [#allocation6], 4294966016 }
  0x33   :  { %568 = dma.done.wait [#allocation9], 4096  }
  0x34   :  { %569 = vsyncadd [#allocation9], 4294963200  ;;  %v580_v0 = vmov 0.0   ;;  %vm581_vm0 = vmmov 0   ;;  %v82_v1 = vld [vmem:[#allocation5 + $0x8] sm:$0xff]  ;;  %v81_v2 = vld [vmem:[#allocation5] sm:$0xff]  ;;  %v289_v54 = vlaneseq }
  0x35   :  { %419 = vmatprep.subr.mxu1 %v580_v0  ;;  %423 = vmatprep.mubr.msk.f32.mxu1 %vm581_vm0, %v580_v0  ;;  %v80_v3 = vld [vmem:[#allocation2] sm:$0xff]  ;;  %vm90_vm1 = vcmask 130048   ;;  %v172_v4 = vld [vmem:[#allocation7 + $0x38] sm:$0xff]  ;;  %v171_v5 = vld [vmem:[#allocation7 + $0x30] sm:$0xff]  ;;  %vm180_vm2 = vcmask 523264  }
  0x36   :  { %363 = vmatprep.mubr.f32.mxu0 %v580_v0  ;;  %420 = vmatpush3.msra.mxu1 %v82_v1  ;;  %v170_v6 = vld [vmem:[#allocation7 + $0x28] sm:$0xff]  ;;  %v169_v7 = vld [vmem:[#allocation7 + $0x20] sm:$0xff]  ;;  %v168_v8 = vld [vmem:[#allocation7 + $0x18] sm:$0xff]  ;;  %v290_v55 = vshrl.u32 %v289_v54, 7 }
  0x37   :  { %421 = vmatprep.subr.mxu1 %v580_v0  ;;  %v167_v9 = vld [vmem:[#allocation7 + $0x10] sm:$0xff]  ;;  %v166_v10 = vld [vmem:[#allocation7 + $0x8] sm:$0xff]  ;;  %v165_v11 = vld [vmem:[#allocation7] sm:$0xff] }
  0x38   :  { %422 = vmatpush3.msra.mxu1 %v81_v2  ;;  %v286_v12 = vld [vmem:[#allocation8 + $0xf8] sm:$0xff]  ;;  %v285_v13 = vld [vmem:[#allocation8 + $0xf0] sm:$0xff]  ;;  %v284_v14 = vld [vmem:[#allocation8 + $0xe8] sm:$0xff]  ;;  %v291_v56 = vsub.s32 0, %v290_v55  ;;  %v295_v58 = vsub.s32 1, %v290_v55 }
  0x39   :  { %424 = vmatmul.mubr.msk.f32.vlgmr.msra.gmra.mxu1 %vm90_vm1, %v80_v3  ;;  %426 = vmatprep.subr.mxu1 %v580_v0  ;;  %v283_v15 = vld [vmem:[#allocation8 + $0xe0] sm:$0xff]  ;;  %v282_v16 = vld [vmem:[#allocation8 + $0xd8] sm:$0xff]  ;;  %v281_v17 = vld [vmem:[#allocation8 + $0xd0] sm:$0xff] }
  0x3a   :  { %427 = vmatpush3.msra.mxu1 %v172_v4  ;;  %442 = vmatprep.mubr.msk.f32.mxu1 %vm581_vm0, %v580_v0  ;;  %v280_v18 = vld [vmem:[#allocation8 + $0xc8] sm:$0xff]  ;;  %v279_v19 = vld [vmem:[#allocation8 + $0xc0] sm:$0xff]  ;;  %v278_v20 = vld [vmem:[#allocation8 + $0xb8] sm:$0xff] }
  0x3b   :  { %428 = vmatprep.subr.mxu1 %v580_v0  ;;  %299 = vmatprep.subr.mxu0 %v286_v12  ;;  %v277_v21 = vld [vmem:[#allocation8 + $0xb0] sm:$0xff]  ;;  %v276_v22 = vld [vmem:[#allocation8 + $0xa8] sm:$0xff]  ;;  %v275_v23 = vld [vmem:[#allocation8 + $0xa0] sm:$0xff] }
  0x3c   :  { %429 = vmatpush3.msra.mxu1 %v171_v5  ;;  %300 = vmatpush1.msra.mxu0 %v285_v13  ;;  %v274_v24 = vld [vmem:[#allocation8 + $0x98] sm:$0xff]  ;;  %v273_v25 = vld [vmem:[#allocation8 + $0x90] sm:$0xff]  ;;  %v272_v26 = vld [vmem:[#allocation8 + $0x88] sm:$0xff] }
  0x3d   :  { %430 = vmatprep.subr.mxu1 %v580_v0  ;;  %301 = vmatprep.subr.mxu0 %v284_v14  ;;  %v271_v27 = vld [vmem:[#allocation8 + $0x80] sm:$0xff]  ;;  %v270_v28 = vld [vmem:[#allocation8 + $0x78] sm:$0xff]  ;;  %v269_v29 = vld [vmem:[#allocation8 + $0x70] sm:$0xff] }
  0x3e   :  { %431 = vmatpush3.msra.mxu1 %v170_v6  ;;  %302 = vmatpush1.msra.mxu0 %v283_v15  ;;  %v268_v30 = vld [vmem:[#allocation8 + $0x68] sm:$0xff]  ;;  %v267_v31 = vld [vmem:[#allocation8 + $0x60] sm:$0xff]  ;;  %v266_v32 = vld [vmem:[#allocation8 + $0x58] sm:$0xff] }
  0x3f   :  { %432 = vmatprep.subr.mxu1 %v580_v0  ;;  %303 = vmatprep.subr.mxu0 %v282_v16  ;;  %v265_v33 = vld [vmem:[#allocation8 + $0x50] sm:$0xff]  ;;  %v264_v34 = vld [vmem:[#allocation8 + $0x48] sm:$0xff]  ;;  %v263_v35 = vld [vmem:[#allocation8 + $0x40] sm:$0xff] }
  0x40   :  { %433 = vmatpush3.msra.mxu1 %v169_v7  ;;  %304 = vmatpush1.msra.mxu0 %v281_v17  ;;  %v262_v36 = vld [vmem:[#allocation8 + $0x38] sm:$0xff]  ;;  %v261_v37 = vld [vmem:[#allocation8 + $0x30] sm:$0xff]  ;;  %v260_v38 = vld [vmem:[#allocation8 + $0x28] sm:$0xff] }
  0x41   :  { %434 = vmatprep.subr.mxu1 %v580_v0  ;;  %305 = vmatprep.subr.mxu0 %v280_v18  ;;  %v401_v39 = vld [vmem:[%s649_s2] ss:$0 sm:$0xff]  ;;  %v259_v44 = vld [vmem:[#allocation8 + $0x20] sm:$0xff]  ;;  %v258_v45 = vld [vmem:[#allocation8 + $0x18] sm:$0xff] }
  0x42   :  { %435 = vmatpush3.msra.mxu1 %v168_v8  ;;  %306 = vmatpush1.msra.mxu0 %v279_v19  ;;  %v257_v46 = vld [vmem:[#allocation8 + $0x10] sm:$0xff]  ;;  %v256_v47 = vld [vmem:[#allocation8 + $0x8] sm:$0xff]  ;;  %v255_v48 = vld [vmem:[#allocation8] sm:$0xff] }
  0x43   :  { %436 = vmatprep.subr.mxu1 %v580_v0  ;;  %307 = vmatprep.subr.mxu0 %v278_v20  ;;  %v403_v49 = vld [vmem:[%s651_s4] ss:$0 sm:$0xff]  ;;  %s582_s4 = smov [#allocation10]  }
  0x44   :  { %437 = vmatpush3.msra.mxu1 %v167_v9  ;;  %308 = vmatpush1.msra.mxu0 %v277_v21  ;;  %v287_v57 = vld [vmem:[%s653_s6] sm:$0x3]  ;;  %s390_s26 = sshll.u32 %s582_s4, 4  ;;  %s391_s26 = int_to_ptr.vmem [resolvable:$true] %s390_s26 }
  0x45   :  { %438 = vmatprep.subr.mxu1 %v580_v0  ;;  %309 = vmatprep.subr.mxu0 %v276_v22  ;;  %v292_v59 = vrot.slane %v287_v57, %v291_v56  ;;  %v296_v60 = vrot.slane %v287_v57, %v295_v58  ;;  %s544_s6 = scalar_lea.vmem %s391_s26, 256  ;;  %p549_p7 = scmp.lt.s32.totalorder %s391_s26, %s391_s26 }
  0x46   :  { %439 = vmatpush3.msra.mxu1 %v166_v10  ;;  %310 = vmatpush1.msra.mxu0 %v275_v23  ;;  %p545_p6 = scmp.ne.s32.totalorder %s391_s26, %s544_s6  ;;  %p550_p8 = scmp.lt.s32.totalorder %s544_s6, %s544_s6 }
  0x47   :  { %440 = vmatprep.subr.mxu1 %v580_v0  ;;  %311 = vmatprep.subr.mxu0 %v274_v24 }
  0x48   :  { %441 = vmatpush3.msra.mxu1 %v165_v11  ;;  %312 = vmatpush1.msra.mxu0 %v273_v25  ;;  %p551_p9 = por %p550_p8, %p549_p7 }
  0x49   :  { %313 = vmatprep.subr.mxu0 %v272_v26 }
  0x4a   :  { %314 = vmatpush1.msra.mxu0 %v271_v27  ;;  %p552_p10 = pnand %p551_p9, %p545_p6 }
  0x4b   :  { %315 = vmatprep.subr.mxu0 %v270_v28 }
  0x4c   :  { %316 = vmatpush1.msra.mxu0 %v269_v29 }
  0x4d   :  { %317 = vmatprep.subr.mxu0 %v268_v30 }
  0x4e   :  { %318 = vmatpush1.msra.mxu0 %v267_v31 }
  0x4f   :  { %319 = vmatprep.subr.mxu0 %v266_v32 }
  0x50   :  { %320 = vmatpush1.msra.mxu0 %v265_v33 }
  0x51   :  { %321 = vmatprep.subr.mxu0 %v264_v34 }
  0x52   :  { %322 = vmatpush1.msra.mxu0 %v263_v35 }
  0x53   :  { %323 = vmatprep.subr.mxu0 %v262_v36 }
  0x54   :  { %324 = vmatpush1.msra.mxu0 %v261_v37 }
  0x55   :  { %325 = vmatprep.subr.mxu0 %v260_v38 }
  0x56   :  { %326 = vmatpush1.msra.mxu0 %v259_v44 }
  0x57   :  { %327 = vmatprep.subr.mxu0 %v258_v45 }
  0x58   :  { %328 = vmatpush1.msra.mxu0 %v257_v46 }
  0x59   :  { %329 = vmatprep.subr.mxu0 %v256_v47 }
  0x5a   :  { %330 = vmatpush1.msra.mxu0 %v255_v48 }
  0xf9   :  { %v160_v40 = vpop.f32.mrf.mxu1 }
  0xfa   :  { %v161_v41 = vadd.f32 %v401_v39, %v160_v40 }
  0xfb   :  { %v425_v42 = vpop.f32.mrf.mxu1 }
  0xfc   :  { %v164_v43 = vmax.f32 %v161_v41, 0.0 }
  0xfe   :  { %443 = vmatmul.mubr.msk.f32.vlgmr.msra.gmra.mxu1 %vm180_vm2, %v164_v43 }
 0x1be   :  { %v250_v50 = vpop.f32.mrf.mxu1 }
 0x1bf   :  { %v251_v51 = vadd.f32 %v403_v49, %v250_v50 }
 0x1c0   :  { %v444_v52 = vpop.f32.mrf.mxu1 }
 0x1c1   :  { %v254_v53 = vmax.f32 %v251_v51, 0.0 }
 0x1c3   :  { %364 = vmatmul.mubr.f32.vlgmr.msra.gmra.mxu0 %v254_v53 }
 0x283   :  { %v365_v61 = vpop.f32.mrf.mxu0 }
 0x284   :  { %v366_v62 = vadd.f32 %v365_v61, %v292_v59 }
 0x285   :  { %v367_v63 = vpop.f32.mrf.mxu0 }
 0x286   :  { %v405_v0 = vmul.f32 -1.442695, %v366_v62  ;;  %v368_v1 = vadd.f32 %v367_v63, %v296_v60 }
 0x288   :  { %456 = vpow2.f32 %v405_v0  ;;  %v406_v2 = vmul.f32 -1.442695, %v368_v1 }
 0x28a   :  { %458 = vpow2.f32 %v406_v2 }
 0x295   :  { %v457_v3 = vpop.eup %456 }
 0x296   :  { %v376_v4 = vadd.f32 1.0, %v457_v3 }
 0x297   :  { %v459_v5 = vpop.eup %458 }
 0x298   :  { %460 = vrcp.f32 %v376_v4  ;;  %v377_v6 = vadd.f32 1.0, %v459_v5 }
 0x29a   :  { %462 = vrcp.f32 %v377_v6 }
 0x2a5   :  { %v461_v7 = vpop.eup %460 }
 0x2a6   :  { %382 = vst [vmem:[#allocation10] sm:$0xff] %v461_v7 }
 0x2a7   :  { %v463_v8 = vpop.eup %462 }
 0x2a8   :  { %383 = vst [vmem:[#allocation10 + $0x8] sm:$0xff] %v463_v8 }
 0x2a9   :  { %555 = shalt.err (!%p552_p10)
}
 0x2aa   :  { %393 = dma.vmem_to_hbm [thread:$0]  %s391_s26, 256, %s654_s7, [#allocation4]  }
 0x2ab   :  { %570 = dma.done.wait [#allocation4], 256  }
 0x2ac   :  { %571 = vsyncadd [#allocation4], 4294967040 }
 0x2ad   :  { %397 = vsyncpa [#allocation3], 1 }
 0x2ae   :  { %398 = vsyncpa [#allocation6], 1 }
 0x2af   :  { %399 = vsyncpa [#allocation9], 1 }
 0x2b0   :  { %400 = vsyncpa [#allocation4], 1 }

</bundles_post_ra>
